<compile_context>
chip_gen: v7x
topology: tpu7x:2x2x1
jax: 0.10.0
libtpu: 0.0.40
codegen_flags: <defaults>
</compile_context>

<pallas_src>
import functools
import math

import jax
import jax.numpy as jnp
from jax import lax
from jax.experimental import pallas as pl
from jax.experimental.pallas import tpu as pltpu


# ---------------------------------------------------------------------------
# Buffer construction (mirrors torch __init__)
# ---------------------------------------------------------------------------
def make_positional_encoding(d_model: int, max_len: int = 52) -> jnp.ndarray:
    position = jnp.arange(0, max_len, dtype=jnp.float32)[:, None]            # (L, 1)
    div_term = jnp.exp(
        jnp.arange(0, d_model, 2, dtype=jnp.float32) * (-math.log(10000.0) / d_model)
    )                                                                         # (D/2,)
    pe = jnp.zeros((max_len, d_model), dtype=jnp.float32)
    pe = pe.at[:, 0::2].set(jnp.sin(position * div_term))
    pe = pe.at[:, 1::2].set(jnp.cos(position * div_term))
    # torch: pe.unsqueeze(0).transpose(0, 1) -> (max_len, 1, d_model)
    return pe[:, None, :]


# ---------------------------------------------------------------------------
# Stateless per-element PRNG (lowbias32 hash) -- pure 32-bit VPU int ops.
# ---------------------------------------------------------------------------
def _hash_u32(x):
    x = x ^ (x >> 16)
    x = x * jnp.uint32(0x7FEB352D)
    x = x ^ (x >> 15)
    x = x * jnp.uint32(0x846CA68B)
    x = x ^ (x >> 16)
    return x


# ---------------------------------------------------------------------------
# Pallas kernels (native (S, B, D) layout, grid over S)
# ---------------------------------------------------------------------------
def pe_add_kernel(x_ref, pe_ref, o_ref):
    # x_ref: (ts, B, D); pe_ref: (ts, 1, D) -> broadcast add over batch axis.
    o_ref[...] = x_ref[...] + pe_ref[...]


def pe_add_dropout_kernel(seed_ref, x_ref, pe_ref, o_ref, *, p, block_rows):
    ts, b, d = x_ref.shape
    y = x_ref[...] + pe_ref[...]

    # Grid-invariant dropout mask: hash(global element index, seed).
    row_off = (pl.program_id(0) * block_rows).astype(jnp.uint32)
    r = lax.broadcasted_iota(jnp.int32, (ts, b, d), 0).astype(jnp.uint32)
    c = lax.broadcasted_iota(jnp.int32, (ts, b, d), 1).astype(jnp.uint32)
    l = lax.broadcasted_iota(jnp.int32, (ts, b, d), 2).astype(jnp.uint32)
    gidx = (row_off + r) * jnp.uint32(b * d) + c * jnp.uint32(d) + l

    seed_u = seed_ref[0].astype(jnp.uint32) * jnp.uint32(0x9E3779B9)
    bits = _hash_u32(gidx ^ seed_u)

    # keep iff low-24 bits >= p * 2^24 (integer compare; bias <= 2^-24).
    threshold = jnp.uint32(int(round(p * (1 << 24))))
    keep = (bits & jnp.uint32(0x00FFFFFF)) >= threshold
    scale = jnp.float32(1.0 / (1.0 - p))
    # Scale folded into the select -> one fewer tile-sized temporary.
    o_ref[...] = (jnp.where(keep, scale, jnp.float32(0.0)) * y).astype(o_ref.dtype)


# ---------------------------------------------------------------------------
# Tile sizing: ~target bytes per x tile, >=2 grid blocks when possible (v7x).
# ---------------------------------------------------------------------------
def _choose_row_tile(s, b, d, elem_bytes, target_tile_bytes=2 << 20):
    bytes_per_row = max(1, b * d * elem_bytes)
    ts = max(1, target_tile_bytes // bytes_per_row)
    ts = min(ts, s)
    if s >= 2 and ts >= s:
        ts = pl.cdiv(s, 2)   # make sure both v7x TensorCores get a block
    return int(ts)


# ---------------------------------------------------------------------------
# Wrapper
# ---------------------------------------------------------------------------
def positional_encoding_forward(x, pe, *, p=0.1, training=False, seed=0,
                                target_tile_bytes=2 << 20):
    """x: (S, B, D) float32; pe: (max_len, 1, D) float32. Returns (S, B, D)."""
    s, b, d = x.shape
    assert pe.shape[0] >= s and pe.shape[2] == d

    ts = _choose_row_tile(s, b, d, x.dtype.itemsize, target_tile_bytes)
    grid = (pl.cdiv(s, ts),)

    # Explicit VMEM budget: double-buffered x/out/pe (+ dropout temporaries),
    # with 2x margin, clamped under v7x's 64 MiB physical VMEM.
    x_tile = ts * b * d * x.dtype.itemsize
    pe_tile = ts * d * pe.dtype.itemsize
    vmem_need = 2 * (2 * x_tile + pe_tile) + (4 * x_tile if training else 0)
    vmem_limit = int(min(max(2 * vmem_need, 16 << 20), 48 << 20))

    cparams = pltpu.CompilerParams(dimension_semantics=("parallel",),
                                   vmem_limit_bytes=vmem_limit)
    cost = pl.CostEstimate(
        flops=x.size,
        transcendentals=0,
        bytes_accessed=2 * x.size * x.dtype.itemsize + s * d * pe.dtype.itemsize,
    )

    if not training:
        return pl.pallas_call(
            pe_add_kernel,
            out_shape=jax.ShapeDtypeStruct(x.shape, x.dtype),
            grid_spec=pltpu.PrefetchScalarGridSpec(
                num_scalar_prefetch=0,
                grid=grid,
                in_specs=[
                    pl.BlockSpec((ts, b, d), lambda i: (i, 0, 0)),
                    pl.BlockSpec((ts, 1, d), lambda i: (i, 0, 0)),  # pe rows align with x rows
                ],
                out_specs=pl.BlockSpec((ts, b, d), lambda i: (i, 0, 0)),
            ),
            compiler_params=cparams,
            cost_estimate=cost,
        )(x, pe)

    seed_arr = jnp.array([seed], dtype=jnp.int32)
    return pl.pallas_call(
        functools.partial(pe_add_dropout_kernel, p=p, block_rows=ts),
        out_shape=jax.ShapeDtypeStruct(x.shape, x.dtype),
        grid_spec=pltpu.PrefetchScalarGridSpec(
            num_scalar_prefetch=1,   # seed lands in SMEM, passed first to kernel
            grid=grid,
            in_specs=[
                pl.BlockSpec((ts, b, d), lambda i, seed_ref: (i, 0, 0)),
                pl.BlockSpec((ts, 1, d), lambda i, seed_ref: (i, 0, 0)),
            ],
            out_specs=pl.BlockSpec((ts, b, d), lambda i, seed_ref: (i, 0, 0)),
        ),
        compiler_params=cparams,
        cost_estimate=cost,
    )(seed_arr, x, pe)


# ---------------------------------------------------------------------------
# Main
# ---------------------------------------------------------------------------
if __name__ == "__main__":
    d_model = 32
    max_len = 52
    seq_len = 8
    batch = 2
    p = 0.1

    key = jax.random.PRNGKey(0)
    x = jax.random.normal(key, (seq_len, batch, d_model), dtype=jnp.float32)
    pe = make_positional_encoding(d_model, max_len)

    # Eval mode (dropout = identity): exact check vs reference.
    out = jax.block_until_ready(positional_encoding_forward(x, pe, p=p, training=False))
    ref = x + pe[:seq_len]
    assert out.shape == x.shape
    assert jnp.allclose(out, ref, atol=1e-6, rtol=1e-6), "eval-mode mismatch vs reference"

    # Training mode: every output element must be either 0 (dropped) or
    # (x + pe) / (1 - p) (kept).
    out_t = jax.block_until_ready(
        positional_encoding_forward(x, pe, p=p, training=True, seed=1234))
    scale = 1.0 / (1.0 - p)
    kept_ok = jnp.abs(out_t - ref * scale) < 1e-4
    dropped_ok = jnp.abs(out_t) < 1e-12
    assert out_t.shape == x.shape
    assert bool(jnp.all(kept_ok | dropped_ok)), "training-mode dropout mismatch"

    print("KERNEL_OK")
</pallas_src>

<mosaic_0001>
module attributes {stable_mosaic.version = 11 : i64} {
  func.func @pe_add_kernel(%arg0: i32, %arg1: memref<4x2x32xf32, #tpu.memory_space<vmem>>, %arg2: memref<4x1x32xf32, #tpu.memory_space<vmem>>, %arg3: memref<4x2x32xf32, #tpu.memory_space<vmem>>) attributes {dimension_semantics = [#tpu.dimension_semantics<parallel>], iteration_bounds = array<i64: 2>, scalar_prefetch = 0 : i64, scratch_operands = 0 : i64, tpu.core_type = #tpu.core_type<tc>, window_params = [{transform_indices = @transform_0, window_bounds = array<i64: 4, 2, 32>}, {transform_indices = @transform_1, window_bounds = array<i64: 4, 1, 32>}, {transform_indices = @transform_2, window_bounds = array<i64: 4, 2, 32>}]} {
    %c0 = arith.constant 0 : index
    %c0_0 = arith.constant 0 : index
    %c0_1 = arith.constant 0 : index
    %0 = vector.load %arg1[%c0, %c0_0, %c0_1] : memref<4x2x32xf32, #tpu.memory_space<vmem>>, vector<4x2x32xf32>
    %c0_2 = arith.constant 0 : index
    %c0_3 = arith.constant 0 : index
    %c0_4 = arith.constant 0 : index
    %1 = vector.load %arg2[%c0_2, %c0_3, %c0_4] : memref<4x1x32xf32, #tpu.memory_space<vmem>>, vector<4x1x32xf32>
    %2 = vector.broadcast %1 : vector<4x1x32xf32> to vector<4x2x32xf32>
    %3 = arith.addf %0, %2 : vector<4x2x32xf32>
    %c0_5 = arith.constant 0 : index
    %c0_6 = arith.constant 0 : index
    %c0_7 = arith.constant 0 : index
    %4 = vector.load %arg3[%c0_5, %c0_6, %c0_7] : memref<4x2x32xf32, #tpu.memory_space<vmem>>, vector<4x2x32xf32>
    tpu.vector_store %arg3[%c0_5, %c0_6, %c0_7], %3 {strides = array<i32>} : memref<4x2x32xf32, #tpu.memory_space<vmem>>, vector<4x2x32xf32>,
    return
  }
  func.func @transform_0(%arg0: i32) -> (i32, i32, i32) {
    %c0_i32 = arith.constant 0 : i32
    %c0_i32_0 = arith.constant 0 : i32
    %c0_i32_1 = arith.constant 0 : i32
    return %arg0, %c0_i32, %c0_i32_0 : i32, i32, i32
  }
  func.func @transform_1(%arg0: i32) -> (i32, i32, i32) {
    %c0_i32 = arith.constant 0 : i32
    %c0_i32_0 = arith.constant 0 : i32
    %c0_i32_1 = arith.constant 0 : i32
    return %arg0, %c0_i32, %c0_i32_0 : i32, i32, i32
  }
  func.func @transform_2(%arg0: i32) -> (i32, i32, i32) {
    %c0_i32 = arith.constant 0 : i32
    %c0_i32_0 = arith.constant 0 : i32
    %c0_i32_1 = arith.constant 0 : i32
    return %arg0, %c0_i32, %c0_i32_0 : i32, i32, i32
  }
}

</mosaic_0001>

<bundles_post_ra>
// kernel: tpu_custom_call.1
= control target key start
LH: loop header
LB: loop body
LE: loop exit
PB: predicated region body
PF: predicated region fallthrough
CT: control target
= control target key end

     0   :  { %7 = vsyncpa [#allocation3], 0  ;;  %s544_s0 = inlined_call_operand.vmem [shape: f32[8,2,32], index: 0, kind: input, shape index: {}]   ;;  %s545_s1 = inlined_call_operand.vmem [shape: f32[52,1,32], index: 1, kind: input, shape index: {}]   ;;  %s546_s2 = inlined_call_operand.hbm [shape: f32[8,2,32], index: 2, kind: output, shape index: {}]  }
   0x1   :  { %9 = vsyncpa [#allocation3 + $0x1], 0  ;;  %s431_s9 = smov 0   ;;  %s433_s10 = smov 0  }
   0x2   :  { %s435_s11 = smov 0   ;;  %s437_s12 = smov 0  }
   0x3 LB: > { %s452_s13 = sadd.s32 4294967295, %s411_s12   ;;  %s290_s14 = sadd.s32 4294967294, %s411_s12   ;;  %s411_s12 = sphi %s437_s12, %s552_s12   ;;  %s407_s11 = sphi %s435_s11, %s551_s11   ;;  %s403_s10 = sphi %s433_s10, %s550_s10   ;;  %s399_s9 = sphi %s431_s9, %s549_s9  }
   0x4   : > { %s456_s15 = sadd.s32 1, %s411_s12   ;;  %s74_s16 = sadd.s32 1, %s407_s11 }
   0x5   : > { %s71_s17 = ssub.s32 %s411_s12, %s456_s15  ;;  %p84_p0 = scmp.ne.s32.totalorder %s407_s11, %s403_s10 }
   0x6   : > { %p72_p1 = scmp.eq.s32.totalorder %s71_s17, 0  ;;  %p85_p2 = scmp.eq.s32.totalorder %s452_s13, 1 }
   0x7   : > { %p90_p3 = scmp.ne.s32.totalorder %s403_s10, %s399_s9  ;;  %p91_p4 = scmp.eq.s32.totalorder %s290_s14, 1 }
   0x8   : > { %s467_s18 = scalar_select %p72_p1, %s407_s11, %s74_s16  }
   0x9   : > { %p469_p5 = por %p85_p2, %p84_p0  ;;  %p473_p6 = por %p91_p4, %p90_p3 }
   0xa   : > { %p293_p7 = scmp.ge.s32.totalorder %s411_s12, 1  ;;  %p126_p8 = scmp.lt.s32.totalorder %s411_s12, 3 }
   0xc   : > { %p127_p9 = pnand %p293_p7, %p126_p8 }
   0xd   : > { %s149_s21 = sand.u32 (!%p127_p9), 1, %s403_s10   ;;  %s295_s22 = sshll.u32 (!%p127_p9), %s452_s13, 2  ;;  %vm200_vm0 = vcmask (!%p127_p9), 254976  }
   0xe   : > { %130 = sbr.rel (%p127_p9) target bundleno = 48 (0x30), region = 28  ;;  %s294_s23 = sshll.u32 (!%p127_p9), %s149_s21, 3 }
   0xf   : > { %p153_p10 = scmp.lt.s32.totalorder (!%p127_p9), %s295_s22, 7  ;;  %p159_p11 = scmp.lt.s32.totalorder (!%p127_p9), %s295_s22, 51 }
  0x10   : > { %s151_s4 = scalar_lea.vmem (!%p127_p9), [#allocation2], %s294_s23  ;;  %s307_s6 = sshll.u32 (!%p127_p9), %s452_s13, 7 }
  0x11   : > { %s219_s5 = sshll.u32 (!%p127_p9), %s151_s4, 4  ;;  %s495_s14 = scalar_lea.hbm (!%p127_p9), %s546_s2, %s307_s6  ;;  %s490_s5 = int_to_ptr.vmem [resolvable:$true] %s219_s5 }
  0x12   : > { %s503_s13 = scalar_lea.sflag (!%p127_p9), [#allocation3], %s149_s21  ;;  %s349_s16 = scalar_lea.vmem (!%p127_p9), %s490_s5, 128 }
  0x13   : > { %p350_p12 = scmp.ne.s32.totalorder (!%p127_p9), %s490_s5, %s349_s16  ;;  %s413_s17 = smov (!%p127_p9), [#allocation2]  }
  0x15   : > { %s154_s24 = scalar_select %p153_p10, %s295_s22, 7 }
  0x16   : > { %s554_s22 = smov (!%p159_p11, %s295_s22), 51  ;;  %p351_p13 = pnand %p350_p12, %p469_p5 }
  0x17   : > { %s296_s25 = sshll.u32 %s154_s24, 1  ;;  %s161_s3 = scalar_lea.vmem %s545_s1, %s554_s22 }
  0x18   : > { %s156_s28 = scalar_lea.vmem %s544_s0, %s296_s25  ;;  %v298_v1 = vld [vmem:[%s161_s3] ss:$0 sm:$0xff]  ;;  %v299_v4 = vld [vmem:[%s161_s3 + $0x1] ss:$0 sm:$0xff]  ;;  %v300_v7 = vld [vmem:[%s161_s3 + $0x2] ss:$0 sm:$0xff]  ;;  %p352_p0 = pneg %p351_p13 }
  0x19   : > { %v164_v0 = vld [vmem:[%s156_s28] sm:$0x3]  ;;  %v165_v3 = vld [vmem:[%s156_s28 + $0x2] sm:$0x3]  ;;  %v166_v5 = vld [vmem:[%s156_s28 + $0x4] sm:$0x3] }
  0x1a   : > { %v196_v2 = vadd.f32 %v298_v1, %v164_v0  ;;  %v197_v6 = vadd.f32 %v299_v4, %v165_v3  ;;  %v167_v8 = vld [vmem:[%s156_s28 + $0x6] sm:$0x3]  ;;  %v301_v9 = vld [vmem:[%s161_s3 + $0x3] ss:$0 sm:$0xff]  ;;  %v198_v10 = vadd.f32 %v300_v7, %v166_v5  ;;  %s353_s22 = sshll.u32 %s413_s17, 4  ;;  %s354_s22 = int_to_ptr.vmem [resolvable:$false] %s353_s22 }
  0x1b   : > { %v199_v11 = vadd.f32 %v301_v9, %v167_v8  ;;  %s355_s23 = scalar_lea.vmem %s354_s22, 256  ;;  %p356_p1 = scmp.lt.s32.totalorder %s490_s5, %s354_s22 }
  0x1c   : > { %201 = vst.msk [vmem:[%s151_s4] sm:$0x3] %vm200_vm0, %v196_v2  ;;  %202 = vst.msk [vmem:[%s151_s4 + $0x2] sm:$0x3] %vm200_vm0, %v197_v6  ;;  %p357_p2 = scmp.lt.s32.totalorder %s355_s23, %s349_s16 }
  0x1d   : > { %203 = vst.msk [vmem:[%s151_s4 + $0x4] sm:$0x3] %vm200_vm0, %v198_v10  ;;  %204 = vst.msk [vmem:[%s151_s4 + $0x6] sm:$0x3] %vm200_vm0, %v199_v11 }
  0x1e   : > { %p358_p3 = por %p357_p2, %p356_p1 }
  0x20   : > { %p359_p4 = pnand %p358_p3, %p352_p0 }
  0x22   : > { %362 = shalt.err (!%p359_p4)
}
  0x23   : > { %s363_s21 = scalar_lea.hbm %s495_s14, 128  ;;  %s367_s26 = scalar_lea.hbm %s546_s2, 256 }
  0x24   : > { %p364_p7 = scmp.ne.s32.totalorder %s495_s14, %s363_s21  ;;  %p368_p10 = scmp.lt.u32.totalorder %s495_s14, %s546_s2 }
  0x25   : > { %p369_p11 = scmp.lt.u32.totalorder %s367_s26, %s363_s21  ;;  %p371_p13 = scmp.lt.u32.totalorder %s363_s21, %s495_s14 }
  0x26   : > { %p365_p8 = pnand %p364_p7, %p469_p5 }
  0x27   : > { %p370_p12 = por %p369_p11, %p368_p10 }
  0x28   : > { %p366_p9 = pneg %p365_p8 }
  0x29   : > { %p372_p0 = por %p371_p13, %p370_p12 }
  0x2b   : > { %p373_p1 = pnand %p372_p0, %p366_p9 }
  0x2d   : > { %376 = shalt.err (!%p373_p1)
}
  0x2e   : > { %s414_s29 = smov 32   ;;  %s415_s30 = smov 2  }
  0x2f   : > { %308 = dma.vmem_to_hbm [thread:$0]  (%p469_p5), %s490_s5, 128, %s495_s14, %s503_s13, %s414_s29, %s414_s29, %s415_s30  }
  0x30 PF: > { %p314_p2 = scmp.ge.s32.totalorder %s411_s12, 2  ;;  %s234_s3 = sand.u32 1, %s399_s9  }
  0x31   : > { %s235_s4 = scalar_lea.sflag [#allocation3], %s234_s3 }
  0x32   : > { %p311_p3 = pnand %p314_p2, %p473_p6 }
  0x34   : > { %394 = dma.done.wait (!%p311_p3), %s235_s4, 128  }
  0x35   : > { %396 = vsyncadd (!%p311_p3), %s235_s4, 4294967168  ;;  %p12_p4 = scmp.ge.s32.totalorder %s456_s15, 4   ;;  %s549_s9 = smov %s403_s10 }
  0x36   : > { %s550_s10 = smov %s407_s11  ;;  %s551_s11 = smov %s467_s18 }
  0x37   : > { %s552_s12 = smov %s456_s15  ;;  %14 = sbr.rel (!%p12_p4) target bundleno = 3 (0x3), region = 66 }
  0x3e   :  { %240 = vsyncpa [#allocation3], 1 }
  0x3f   :  { %242 = vsyncpa [#allocation3 + $0x1], 1 }

</bundles_post_ra>
